<compile_context>
chip_gen: v6e
topology: v6e:2x2x1
jax: 0.10.0
libtpu: 0.0.40
codegen_flags: <defaults>
</compile_context>

<pallas_src>
import jax
import jax.numpy as jnp
from jax.experimental import pallas as pl
from jax.experimental.pallas import tpu as pltpu


def kt_gather_bce_kernel(nvalid_ref, ids_ref, logit_ref, y_ref,
                         pred_ref, psum_ref):
    """Fused per-skill-logit gather + sigmoid + BCE partial sum.

    nvalid_ref : [1]            i32 SMEM  (true element count N, scalar prefetch)
    ids_ref    : [1, TILE_N]    i32 VMEM  (skill ids, N on the lane axis)
    logit_ref  : [S_pad, 1]     f32 VMEM  (precomputed per-skill logits, resident)
    y_ref      : [1, TILE_N]    f32 VMEM  (labels in {0, 1})
    pred_ref   : [1, TILE_N]    f32 VMEM  (sigmoid predictions, lane-dense out)
    psum_ref   : [1, 128]       f32 VMEM  (per-tile BCE partial sum, broadcast)
    """
    tile_n = ids_ref.shape[1]
    s_pad = logit_ref.shape[0]

    ids = ids_ref[...]                                            # [1, TILE_N]

    # Gather: iota-compare on the VPU, select the resident per-skill logit
    # column, reduce over the sublane (skill) axis on the XLU.  No MXU work.
    skill_iota = jax.lax.broadcasted_iota(jnp.int32, (s_pad, tile_n), 0)
    match = skill_iota == ids                                     # [S_pad, TILE_N]
    z = jnp.sum(jnp.where(match, logit_ref[...], 0.0),
                axis=0, keepdims=True)                            # [1, TILE_N]

    p = jax.nn.sigmoid(z)
    pred_ref[...] = p                                             # lane-dense store

    # BCE (torch.nn.BCELoss semantics: each log term clamped at -100).
    y = y_ref[...]
    log_p = jnp.maximum(jnp.log(p), -100.0)
    log_1mp = jnp.maximum(jnp.log(1.0 - p), -100.0)
    per_elem = -(y * log_p + (1.0 - y) * log_1mp)                 # [1, TILE_N]

    # Mask padded tail columns so the final mean divides by the true N.
    col = pl.program_id(0) * tile_n + jax.lax.broadcasted_iota(
        jnp.int32, (1, tile_n), 1)
    valid = (col < nvalid_ref[0]).astype(jnp.float32)
    tile_sum = jnp.sum(per_elem * valid)

    psum_ref[...] = jnp.broadcast_to(tile_sum, (1, 128))


def prepare_kt_head_params(emb_table, w, b):
    """One-time parameter prep (hoist out of the per-step path / cache in training).

    Collapses Embedding(S, H) + Linear(H, 1) + bias into a single per-skill
    logit column of shape [S_pad, 1] (S padded to a sublane multiple of 8)."""
    num_skills, hidden = emb_table.shape
    s_pad = 8 * pl.cdiv(num_skills, 8)
    logits = (emb_table.astype(jnp.float32)
              @ w.reshape(hidden, 1).astype(jnp.float32)).reshape(-1)
    logits = logits + jnp.asarray(b, jnp.float32)
    logit_col = jnp.zeros((s_pad, 1), jnp.float32).at[:num_skills, 0].set(logits)
    return logit_col


def kt_forward_and_bce(skill_ids, labels, logit_col, *, max_tile_n=2048):
    """skill_ids: [N] int, labels: [N] {0,1}, logit_col: [S_pad, 1] f32
    (from prepare_kt_head_params).

    Returns (preds [N] f32, mean BCE loss scalar f32)."""
    n = skill_ids.shape[0]
    s_pad = logit_col.shape[0]

    # Tile sizing: as large as possible (amortize per-grid-step overhead) but
    # capped so the grid keeps >= 2 steps when N allows it (v7x dual TC).
    half = 128 * pl.cdiv(pl.cdiv(n, 2), 128)
    tile_n = int(max(128, min(max_tile_n, half)))
    n_pad = tile_n * pl.cdiv(n, tile_n)
    grid = n_pad // tile_n

    # Per-call padding: N on the lane axis; padded ids are 0 (a valid skill id),
    # padded labels 0 -- both are masked out of the loss and sliced off preds.
    ids2 = jnp.zeros((1, n_pad), jnp.int32).at[0, :n].set(
        skill_ids.astype(jnp.int32))
    y2 = jnp.zeros((1, n_pad), jnp.float32).at[0, :n].set(
        labels.astype(jnp.float32))
    n_valid = jnp.array([n], jnp.int32)

    preds2, psums = pl.pallas_call(
        kt_gather_bce_kernel,
        grid_spec=pltpu.PrefetchScalarGridSpec(
            num_scalar_prefetch=1,
            grid=(grid,),
            in_specs=[
                pl.BlockSpec((1, tile_n), lambda i, nv: (0, i)),   # ids
                pl.BlockSpec((s_pad, 1), lambda i, nv: (0, 0)),    # per-skill logits (resident)
                pl.BlockSpec((1, tile_n), lambda i, nv: (0, i)),   # labels
            ],
            out_specs=(
                pl.BlockSpec((1, tile_n), lambda i, nv: (0, i)),   # preds
                pl.BlockSpec((1, 128), lambda i, nv: (0, i)),      # partial sums
            ),
        ),
        out_shape=(
            jax.ShapeDtypeStruct((1, n_pad), jnp.float32),
            jax.ShapeDtypeStruct((1, grid * 128), jnp.float32),
        ),
        compiler_params=pltpu.CompilerParams(
            dimension_semantics=("parallel",),     # disjoint output blocks per tile
            vmem_limit_bytes=32 * 1024 * 1024,
        ),
    )(n_valid, ids2, logit_col, y2)

    preds = preds2[0, :n]
    loss = jnp.sum(psums[0].reshape(grid, 128)[:, 0]) / n
    return preds, loss


if __name__ == "__main__":
    key = jax.random.PRNGKey(0)
    k_emb, k_w, k_b, k_skill, k_label = jax.random.split(key, 5)

    # Small KT-style shapes: 2 students, 200-step sequences, 64 skills, H=32.
    batch, seq_len, hidden, num_skills = 2, 200, 32, 64

    # BaseModel.init_weights for Embedding/Linear: normal(mean=0, std=0.01).
    emb_table = 0.01 * jax.random.normal(k_emb, (num_skills, hidden), jnp.float32)
    w = 0.01 * jax.random.normal(k_w, (hidden, 1), jnp.float32)
    b = 0.01 * jax.random.normal(k_b, (), jnp.float32)

    # Synthetic feed_dict: skill_seq [B, S] int ids, label_seq [B, S] in {0,1}.
    skill_seq = jax.random.randint(k_skill, (batch, seq_len), 0, num_skills)
    label_seq = jax.random.bernoulli(k_label, 0.5, (batch, seq_len)).astype(jnp.float32)

    skill_flat = skill_seq.reshape(-1)
    label_flat = label_seq.reshape(-1)

    # One-time parameter prep (would be cached across steps in a training loop).
    logit_col = prepare_kt_head_params(emb_table, w, b)

    preds, loss = kt_forward_and_bce(skill_flat, label_flat, logit_col)
    preds = jax.block_until_ready(preds)
    loss = jax.block_until_ready(loss)

    # Pure-JAX reference (torch.nn.BCELoss(mean) semantics, -100 log clamp).
    emb_x = emb_table[skill_flat]                              # [N, H]
    ref_logits = (emb_x @ w).reshape(-1) + b
    ref_p = jax.nn.sigmoid(ref_logits)
    ref_loss = jnp.mean(
        -(label_flat * jnp.maximum(jnp.log(ref_p), -100.0)
          + (1.0 - label_flat) * jnp.maximum(jnp.log(1.0 - ref_p), -100.0)))

    assert preds.shape == (batch * seq_len,)
    assert jnp.allclose(preds, ref_p, atol=1e-5, rtol=1e-5)
    assert jnp.allclose(loss, ref_loss, atol=1e-5, rtol=1e-5)

    print("KERNEL_OK")
</pallas_src>

<mosaic_0001>
module attributes {stable_mosaic.version = 11 : i64} {
  func.func @kt_gather_bce_kernel(%arg0: i32, %arg1: memref<1xi32, #tpu.memory_space<smem>>, %arg2: memref<1x256xi32, #tpu.memory_space<vmem>>, %arg3: memref<64x1xf32, #tpu.memory_space<vmem>>, %arg4: memref<1x256xf32, #tpu.memory_space<vmem>>, %arg5: memref<1x256xf32, #tpu.memory_space<vmem>>, %arg6: memref<1x128xf32, #tpu.memory_space<vmem>>) attributes {dimension_semantics = [#tpu.dimension_semantics<parallel>], iteration_bounds = array<i64: 2>, scalar_prefetch = 1 : i64, scratch_operands = 0 : i64, tpu.core_type = #tpu.core_type<tc>, window_params = [{transform_indices = @transform_0, window_bounds = array<i64: 1, 256>}, {pipeline_mode = #tpu.pipeline_mode<synchronous>, transform_indices = @transform_1, window_bounds = array<i64: 64, 1>}, {transform_indices = @transform_2, window_bounds = array<i64: 1, 256>}, {transform_indices = @transform_3, window_bounds = array<i64: 1, 256>}, {transform_indices = @transform_4, window_bounds = array<i64: 1, 128>}]} {
    %c0 = arith.constant 0 : index
    %c0_0 = arith.constant 0 : index
    %0 = vector.load %arg2[%c0, %c0_0] : memref<1x256xi32, #tpu.memory_space<vmem>>, vector<1x256xi32>
    %1 = tpu.iota {dimensions = array<i32: 0>} : vector<64x256xi32>
    %2 = vector.broadcast %0 : vector<1x256xi32> to vector<64x256xi32>
    %3 = arith.cmpi eq, %1, %2 : vector<64x256xi32>
    %c0_1 = arith.constant 0 : index
    %c0_2 = arith.constant 0 : index
    %4 = vector.load %arg3[%c0_1, %c0_2] : memref<64x1xf32, #tpu.memory_space<vmem>>, vector<64x1xf32>
    %cst = arith.constant 0.000000e+00 : f32
    %5 = vector.shape_cast %4 : vector<64x1xf32> to vector<64x1xf32>
    %6 = vector.broadcast %5 : vector<64x1xf32> to vector<64x256xf32>
    %7 = vector.broadcast %cst : f32 to vector<64x256xf32>
    %8 = arith.select %3, %6, %7 : vector<64x256xi1>, vector<64x256xf32>
    %cst_3 = arith.constant dense<0.000000e+00> : vector<256xf32>
    %9 = vector.multi_reduction <add>, %8, %cst_3 [0] : vector<64x256xf32> to vector<256xf32>
    %10 = vector.shape_cast %9 : vector<256xf32> to vector<1x256xf32>
    %11 = arith.negf %10 : vector<1x256xf32>
    %12 = math.exp %11 : vector<1x256xf32>
    %cst_4 = arith.constant 1.000000e+00 : f32
    %13 = vector.broadcast %cst_4 : f32 to vector<1x256xf32>
    %14 = arith.addf %13, %12 : vector<1x256xf32>
    %15 = arith.divf %13, %14 : vector<1x256xf32>
    %c0_5 = arith.constant 0 : index
    %c0_6 = arith.constant 0 : index
    %16 = vector.load %arg5[%c0_5, %c0_6] : memref<1x256xf32, #tpu.memory_space<vmem>>, vector<1x256xf32>
    tpu.vector_store %arg5[%c0_5, %c0_6], %15 {strides = array<i32>} : memref<1x256xf32, #tpu.memory_space<vmem>>, vector<1x256xf32>,
    %c0_7 = arith.constant 0 : index
    %c0_8 = arith.constant 0 : index
    %17 = vector.load %arg4[%c0_7, %c0_8] : memref<1x256xf32, #tpu.memory_space<vmem>>, vector<1x256xf32>
    %18 = math.log %15 : vector<1x256xf32>
    %cst_9 = arith.constant -1.000000e+02 : f32
    %19 = vector.broadcast %cst_9 : f32 to vector<1x256xf32>
    %20 = arith.maximumf %18, %19 : vector<1x256xf32>
    %cst_10 = arith.constant 1.000000e+00 : f32
    %21 = vector.broadcast %cst_10 : f32 to vector<1x256xf32>
    %22 = arith.subf %21, %15 : vector<1x256xf32>
    %23 = math.log %22 : vector<1x256xf32>
    %cst_11 = arith.constant -1.000000e+02 : f32
    %24 = vector.broadcast %cst_11 : f32 to vector<1x256xf32>
    %25 = arith.maximumf %23, %24 : vector<1x256xf32>
    %26 = arith.mulf %17, %20 : vector<1x256xf32>
    %cst_12 = arith.constant 1.000000e+00 : f32
    %27 = vector.broadcast %cst_12 : f32 to vector<1x256xf32>
    %28 = arith.subf %27, %17 : vector<1x256xf32>
    %29 = arith.mulf %28, %25 : vector<1x256xf32>
    %30 = arith.addf %26, %29 : vector<1x256xf32>
    %cst_13 = arith.constant 0.000000e+00 : f32
    %31 = vector.broadcast %cst_13 : f32 to vector<1x256xf32>
    %32 = arith.subf %31, %30 : vector<1x256xf32>
    %c256_i32 = arith.constant 256 : i32
    %33 = arith.muli %arg0, %c256_i32 : i32
    %34 = tpu.iota {dimensions = array<i32: 1>} : vector<1x256xi32>
    %35 = vector.broadcast %33 : i32 to vector<1x256xi32>
    %36 = arith.addi %35, %34 : vector<1x256xi32>
    %c0_14 = arith.constant 0 : index
    %37 = memref.load %arg1[%c0_14] : memref<1xi32, #tpu.memory_space<smem>>
    %38 = vector.broadcast %37 : i32 to vector<1x256xi32>
    %39 = arith.cmpi slt, %36, %38 : vector<1x256xi32>
    %40 = arith.extui %39 : vector<1x256xi1> to vector<1x256xi32>
    %41 = arith.sitofp %40 : vector<1x256xi32> to vector<1x256xf32>
    %42 = arith.mulf %32, %41 : vector<1x256xf32>
    %43 = vector.shape_cast %42 : vector<1x256xf32> to vector<1x1x256xf32>
    %cst_15 = arith.constant dense<0.000000e+00> : vector<1xf32>
    %44 = vector.multi_reduction <add>, %43, %cst_15 [1, 2] : vector<1x1x256xf32> to vector<1xf32>
    %45 = vector.shape_cast %44 : vector<1xf32> to vector<1x1x1xf32>
    %46 = vector.extract %45[0, 0, 0] : f32 from vector<1x1x1xf32>
    %47 = vector.broadcast %46 : f32 to vector<1x128xf32>
    %c0_16 = arith.constant 0 : index
    %c0_17 = arith.constant 0 : index
    %48 = vector.load %arg6[%c0_16, %c0_17] : memref<1x128xf32, #tpu.memory_space<vmem>>, vector<1x128xf32>
    tpu.vector_store %arg6[%c0_16, %c0_17], %47 {strides = array<i32>} : memref<1x128xf32, #tpu.memory_space<vmem>>, vector<1x128xf32>,
    return
  }
  func.func @transform_0(%arg0: i32, %arg1: memref<1xi32, #tpu.memory_space<smem>>) -> (i32, i32) {
    %c0_i32 = arith.constant 0 : i32
    %c0_i32_0 = arith.constant 0 : i32
    return %c0_i32, %arg0 : i32, i32
  }
  func.func @transform_1(%arg0: i32, %arg1: memref<1xi32, #tpu.memory_space<smem>>) -> (i32, i32) {
    %c0_i32 = arith.constant 0 : i32
    %c0_i32_0 = arith.constant 0 : i32
    %c0_i32_1 = arith.constant 0 : i32
    return %c0_i32, %c0_i32_0 : i32, i32
  }
  func.func @transform_2(%arg0: i32, %arg1: memref<1xi32, #tpu.memory_space<smem>>) -> (i32, i32) {
    %c0_i32 = arith.constant 0 : i32
    %c0_i32_0 = arith.constant 0 : i32
    return %c0_i32, %arg0 : i32, i32
  }
  func.func @transform_3(%arg0: i32, %arg1: memref<1xi32, #tpu.memory_space<smem>>) -> (i32, i32) {
    %c0_i32 = arith.constant 0 : i32
    %c0_i32_0 = arith.constant 0 : i32
    return %c0_i32, %arg0 : i32, i32
  }
  func.func @transform_4(%arg0: i32, %arg1: memref<1xi32, #tpu.memory_space<smem>>) -> (i32, i32) {
    %c0_i32 = arith.constant 0 : i32
    %c0_i32_0 = arith.constant 0 : i32
    return %c0_i32, %arg0 : i32, i32
  }
}

</mosaic_0001>

<bundles_post_ra>
// kernel: tpu_custom_call.1
= control target key start
LH: loop header
LB: loop body
LE: loop exit
PB: predicated region body
PF: predicated region fallthrough
CT: control target
= control target key end

     0   :  { %s1018_s0 = inlined_call_operand.<no memory space> [shape: s32[1], index: 0, kind: input, shape index: {}]   ;;  %s1019_s1 = inlined_call_operand.vmem [shape: s32[1,512], index: 1, kind: input, shape index: {}]   ;;  %s1020_s2 = inlined_call_operand.vmem [shape: f32[64,1], index: 2, kind: input, shape index: {}]   ;;  %s1021_s3 = inlined_call_operand.vmem [shape: f32[1,512], index: 3, kind: input, shape index: {}]   ;;  %s1022_s4 = inlined_call_operand.hbm [shape: f32[1,512], index: 4, kind: output, shape index: {0}]   ;;  %s1023_s5 = inlined_call_operand.hbm [shape: f32[1,256], index: 5, kind: output, shape index: {1}]  }
   0x1   :  { %11 = sst [smem:[#allocation3]] %s1018_s0 }
   0x2   :  { %12 = vsyncpa [#allocation5], 0 }
   0x3   :  { %14 = vsyncpa [#allocation5 + $0x1], 0 }
   0x4   :  { %15 = vsyncpa [#allocation7], 0 }
   0x5   :  { %17 = vsyncpa [#allocation7 + $0x1], 0  ;;  %s843_s20 = smov 0   ;;  %s845_s21 = smov 0  }
   0x6   :  { %s847_s22 = smov 0   ;;  %s849_s23 = smov 0  }
   0x7 LB: > { %s864_s0 = sadd.s32 4294967295, %s803_s23   ;;  %s627_s24 = sadd.s32 4294967294, %s803_s23   ;;  %s803_s23 = sphi %s849_s23, %s1029_s23   ;;  %s799_s22 = sphi %s847_s22, %s1028_s22   ;;  %s795_s21 = sphi %s845_s21, %s1027_s21   ;;  %s791_s20 = sphi %s843_s20, %s1026_s20  }
   0x8   : > { %s868_s25 = sadd.s32 1, %s803_s23   ;;  %s103_s26 = sadd.s32 1, %s799_s22 }
   0x9   : > { %s100_s27 = ssub.s32 %s803_s23, %s868_s25  ;;  %p113_p0 = scmp.ne.s32.totalorder %s799_s22, %s795_s21 }
   0xa   : > { %p101_p1 = scmp.eq.s32.totalorder %s100_s27, 0  ;;  %p114_p2 = scmp.eq.s32.totalorder %s864_s0, 1 }
   0xb   : > { %p119_p3 = scmp.ne.s32.totalorder %s795_s21, %s791_s20  ;;  %p120_p4 = scmp.eq.s32.totalorder %s627_s24, 1 }
   0xc   : > { %s879_s28 = scalar_select %p101_p1, %s799_s22, %s103_s26  }
   0xd   : > { %p881_p5 = por %p114_p2, %p113_p0  ;;  %p885_p6 = por %p120_p4, %p119_p3 }
   0xe   : > { %p630_p7 = scmp.ge.s32.totalorder %s803_s23, 1  ;;  %p183_p8 = scmp.lt.s32.totalorder %s803_s23, 3 }
  0x10   : > { %p184_p9 = pnand %p630_p7, %p183_p8 }
  0x11   : > { %s632_s27 = sshll.u32 (!%p184_p9), %s864_s0, 1  ;;  %s941_s9 = sand.u32 (!%p184_p9), 1, %s795_s21  }
  0x12   : > { %187 = sbr.rel (%p184_p9) target bundleno = 466 (0x1d2), region = 32  ;;  %p217_p10 = scmp.lt.s32.totalorder (!%p184_p9), %s632_s27, 3 }
  0x13   : > { %s631_s10 = sshll.u32 (!%p184_p9), %s941_s9, 1  ;;  %s449_s11 = sld [smem:[#allocation3]] (!%p184_p9) }
  0x14   : > { %s636_s12 = sshll.u32 (!%p184_p9), %s864_s0, 8  ;;  %s948_s13 = scalar_lea.vmem (!%p184_p9), [#allocation4], %s631_s10 }
  0x15   : > { %s645_s17 = sshll.u32 (!%p184_p9), %s864_s0, 5  ;;  %s521_s26 = sshll.u32 (!%p184_p9), %s948_s13, 4  ;;  %s522_s26 = int_to_ptr.vmem [resolvable:$true] %s521_s26 }
  0x16   : > { %s519_s24 = scalar_lea.hbm (!%p184_p9), %s1022_s4, %s645_s17  ;;  %s713_s6 = scalar_lea.vmem (!%p184_p9), %s522_s26, 32 }
  0x17   : > { %v263_v0 = vld [vmem:[%s1020_s2 + $0x10] sm:$0xff]  ;;  %v261_v1 = vld [vmem:[%s1020_s2] sm:$0xff]  ;;  %v805_v2 = vmov 0   ;;  %v264_v3 = vld [vmem:[%s1020_s2 + $0x18] sm:$0xff]  ;;  %v228_v9 = vlaneseq  ;;  %s1031_s27 = smov (!%p217_p10, %s632_s27), 3  ;;  %p714_p11 = scmp.ne.s32.totalorder %s522_s26, %s713_s6 }
  0x18   : > { %696 = vset.pattern.permute.xlu1 %v805_v2  ;;  %695 = vset.pattern.permute.xlu0 %v805_v2  ;;  %v262_v4 = vld [vmem:[%s1020_s2 + $0x8] sm:$0xff]  ;;  %v265_v6 = vld [vmem:[%s1020_s2 + $0x20] sm:$0xff]  ;;  %v268_v7 = vld [vmem:[%s1020_s2 + $0x38] sm:$0xff]  ;;  %s219_s8 = scalar_lea.vmem %s1019_s1, %s1031_s27  ;;  %s224_s16 = scalar_lea.vmem %s1021_s3, %s1031_s27 }
  0x19   : > { %281 = vperm.xlu1 %696, %v263_v0   ;;  %271 = vperm.xlu0 %695, %v261_v1   ;;  %v266_v5 = vld [vmem:[%s1020_s2 + $0x28] sm:$0xff]  ;;  %v267_v8 = vld [vmem:[%s1020_s2 + $0x30] sm:$0xff]  ;;  %v919_v10 = vshrl.u32 %v228_v9, 7  ;;  %v227_v13 = vld [vmem:[%s219_s8] sm:$0x3]  ;;  %s503_s27 = scalar_lea.sflag [#allocation5], %s941_s9  ;;  %p715_p12 = pnand %p714_p11, %p881_p5 }
  0x1a   : > { %s808_s7 = smov [#allocation4]  }
  0x1b   : > { %v239_v11 = vsub.s32 0, %v919_v10  ;;  %v243_v12 = vsub.s32 1, %v919_v10  ;;  %v230_v16 = vadd.s32 8, %v919_v10  ;;  %v231_v18 = vadd.s32 16, %v919_v10  ;;  %p716_p13 = pneg %p715_p12  ;;  %s717_s8 = sshll.u32 %s808_s7, 4  ;;  %s718_s8 = int_to_ptr.vmem [resolvable:$false] %s717_s8 }
  0x1c   : > { %v232_v20 = vadd.s32 24, %v919_v10  ;;  %v234_v23 = vadd.s32 40, %v919_v10  ;;  %v233_v24 = vadd.s32 32, %v919_v10  ;;  %v235_v33 = vadd.s32 48, %v919_v10  ;;  %s719_s10 = scalar_lea.vmem %s718_s8, 64  ;;  %p720_p0 = scmp.lt.s32.totalorder %s522_s26, %s718_s8 }
  0x1d   : > { %286 = vperm.xlu1 %696, %v264_v3   ;;  %276 = vperm.xlu0 %695, %v262_v4   ;;  %v240_v14 = vrot.slane %v227_v13, %v239_v11  ;;  %v244_v15 = vrot.slane %v227_v13, %v243_v12  ;;  %v236_v40 = vadd.s32 56, %v919_v10  ;;  %p721_p1 = scmp.lt.s32.totalorder %s719_s10, %s713_s6 }
  0x1f   : > { %vm245_vm0 = vcmp.eq.s32.totalorder %v919_v10, %v240_v14  ;;  %vm246_vm1 = vcmp.eq.s32.totalorder %v919_v10, %v244_v15  ;;  %vm247_vm2 = vcmp.eq.s32.totalorder %v230_v16, %v240_v14  ;;  %vm248_vm3 = vcmp.eq.s32.totalorder %v230_v16, %v244_v15  ;;  %p722_p2 = por %p721_p1, %p720_p0 }
  0x20   : > { %vm249_vm4 = vcmp.eq.s32.totalorder %v231_v18, %v240_v14  ;;  %vm250_vm5 = vcmp.eq.s32.totalorder %v231_v18, %v244_v15  ;;  %vm251_vm6 = vcmp.eq.s32.totalorder %v232_v20, %v240_v14  ;;  %vm252_vm7 = vcmp.eq.s32.totalorder %v232_v20, %v244_v15 }
  0x21   : > { %296 = vperm.xlu1 %696, %v266_v5   ;;  %291 = vperm.xlu0 %695, %v265_v6   ;;  %vm253_vm8 = vcmp.eq.s32.totalorder %v233_v24, %v240_v14  ;;  %vm254_vm9 = vcmp.eq.s32.totalorder %v233_v24, %v244_v15  ;;  %vm255_vm10 = vcmp.eq.s32.totalorder %v234_v23, %v240_v14  ;;  %p723_p3 = pnand %p722_p2, %p716_p13 }
  0x22   : > { %vm256_vm11 = vcmp.eq.s32.totalorder %v234_v23, %v244_v15  ;;  %vm257_vm12 = vcmp.eq.s32.totalorder %v235_v33, %v240_v14  ;;  %vm258_vm13 = vcmp.eq.s32.totalorder %v235_v33, %v244_v15  ;;  %vm259_vm14 = vcmp.eq.s32.totalorder %v236_v40, %v240_v14 }
  0x23   : > { %vm260_vm15 = vcmp.eq.s32.totalorder %v236_v40, %v244_v15 }
  0x25   : > { %306 = vperm.xlu1 %696, %v268_v7   ;;  %301 = vperm.xlu0 %695, %v267_v8  }
  0x94   : > { %v282_v17 = vpop.permute.xlu1 %281  ;;  %v272_v19 = vpop.permute.xlu0 %271 }
  0x95   : > { %v309_v25 = vsel %vm245_vm0, %v272_v19, 0.0  ;;  %v310_v26 = vsel %vm246_vm1, %v272_v19, 0.0  ;;  %v313_v31 = vsel %vm249_vm4, %v282_v17, 0.0  ;;  %v314_v32 = vsel %vm250_vm5, %v282_v17, 0.0 }
  0x96   : > { %v806_v19 = vmov 1966171168   ;;  %vm383_vm0 = vcmp.lt.s32.totalorder %v228_v9, 256 }
  0x97   : > { %v367_v20 = vunpack.c.l.s4 %v806_v19 }
  0x98   : > { %v287_v21 = vpop.permute.xlu1 %286  ;;  %v277_v22 = vpop.permute.xlu0 %276 }
  0x99   : > { %v311_v27 = vsel %vm247_vm2, %v277_v22, 0.0  ;;  %v312_v28 = vsel %vm248_vm3, %v277_v22, 0.0  ;;  %v315_v38 = vsel %vm251_vm6, %v287_v21, 0.0  ;;  %v316_v39 = vsel %vm252_vm7, %v287_v21, 0.0 }
  0x9a   : > { %v325_v29 = vadd.f32 %v311_v27, %v309_v25  ;;  %v338_v30 = vadd.f32 %v312_v28, %v310_v26  ;;  %v368_v21 = vunpack.c.0.s8 %v367_v20  ;;  %v444_v28 = vand.u32 127, %v228_v9 }
  0x9b   : > { %vm487_vm3 = vcmask 1040384  }
  0x9c   : > { %v326_v34 = vadd.f32 %v325_v29, %v313_v31  ;;  %v339_v35 = vadd.f32 %v338_v30, %v314_v32  ;;  %v297_v36 = vpop.permute.xlu1 %296  ;;  %v292_v37 = vpop.permute.xlu0 %291  ;;  %v371_v23 = vsub.s32 %v368_v21, %v919_v10  ;;  %v445_v31 = vadd.s32 128, %v444_v28 }
  0x9d   : > { %v317_v43 = vsel %vm253_vm8, %v292_v37, 0.0  ;;  %v318_v44 = vsel %vm254_vm9, %v292_v37, 0.0  ;;  %v319_v48 = vsel %vm255_vm10, %v297_v36, 0.0  ;;  %v320_v49 = vsel %vm256_vm11, %v297_v36, 0.0 }
  0x9e   : > { %v327_v41 = vadd.f32 %v326_v34, %v315_v38  ;;  %v340_v42 = vadd.f32 %v339_v35, %v316_v39  ;;  %v446_v32 = vstv %s636_s12  ;;  %v450_v35 = vstv %s449_s11 }
  0x9f   : > { %v447_v33 = vadd.s32 %v446_v32, %v444_v28  ;;  %v448_v34 = vadd.s32 %v446_v32, %v445_v31 }
  0xa0   : > { %v328_v45 = vadd.f32 %v327_v41, %v317_v43  ;;  %v341_v46 = vadd.f32 %v340_v42, %v318_v44  ;;  %v302_v47 = vpop.permute.xlu0 %301  ;;  %v307_v50 = vpop.permute.xlu1 %306 }
  0xa1   : > { %v321_v53 = vsel %vm257_vm12, %v302_v47, 0.0  ;;  %v322_v54 = vsel %vm258_vm13, %v302_v47, 0.0  ;;  %v323_v57 = vsel %vm259_vm14, %v307_v50, 0.0  ;;  %v324_v58 = vsel %vm260_vm15, %v307_v50, 0.0 }
  0xa2   : > { %v329_v51 = vadd.f32 %v328_v45, %v319_v48  ;;  %v342_v52 = vadd.f32 %v341_v46, %v320_v49  ;;  %vm451_vm1 = vcmp.lt.s32.totalorder %v447_v33, %v450_v35  ;;  %vm452_vm2 = vcmp.lt.s32.totalorder %v448_v34, %v450_v35 }
  0xa3   : > { %v807_v46 = vmov 0.0  }
  0xa4   : > { %v330_v55 = vadd.f32 %v329_v51, %v321_v53  ;;  %v343_v56 = vadd.f32 %v342_v52, %v322_v54  ;;  %v637_v47 = vsel %vm451_vm1, 1.0, %v807_v46  ;;  %v638_v48 = vsel %vm452_vm2, 1.0, %v807_v46  ;;  %v386_v51 = vld [vmem:[%s224_s16] sm:$0x3] }
  0xa5   : > { %v459_v54 = vcombine.low %v637_v47, %v638_v48 }
  0xa6   : > { %v331_v59 = vadd.f32 %v330_v55, %v323_v57  ;;  %v344_v60 = vadd.f32 %v343_v56, %v324_v58  ;;  %v420_v56 = vsub.f32 1.0, %v386_v51 }
  0xa8   : > { %v332_v61 = vrot.slane %v331_v59, 4  ;;  %v345_v62 = vrot.slane %v344_v60, 4 }
  0xaa   : > { %v333_v63 = vadd.f32 %v332_v61, %v331_v59  ;;  %v346_v0 = vadd.f32 %v345_v62, %v344_v60  ;;  %v466_v60 = vrot.slane %v459_v54, %v371_v23 }
  0xac   : > { %v334_v1 = vrot.slane %v333_v63, 2  ;;  %v347_v2 = vrot.slane %v346_v0, 2 }
  0xae   : > { %v335_v3 = vadd.f32 %v334_v1, %v333_v63  ;;  %v348_v4 = vadd.f32 %v347_v2, %v346_v0  ;;  %v473_v63 = vrot.slane %v466_v60, %v371_v23 }
  0xb0   : > { %v336_v5 = vrot.slane %v335_v3, 1  ;;  %v349_v6 = vrot.slane %v348_v4, 1 }
  0xb2   : > { %v337_v7 = vadd.f32 %v336_v5, %v335_v3  ;;  %v350_v8 = vadd.f32 %v349_v6, %v348_v4 }
  0xb4   : > { %v634_v13 = vmul.f32 -1.442695, %v337_v7  ;;  %v635_v14 = vmul.f32 -1.442695, %v350_v8 }
  0xb6   : > { %697 = vpow2.f32 %v634_v13 }
  0xb7   : > { %699 = vpow2.f32 %v635_v14 }
  0xc3   : > { %v698_v15 = vpop.eup %697 }
  0xc4   : > { %v700_v16 = vpop.eup %699  ;;  %v357_v17 = vadd.f32 1.0, %v698_v15 }
  0xc5   : > { %v358_v18 = vadd.f32 1.0, %v700_v16 }
  0xc6   : > { %701 = vrcp.f32 %v357_v17 }
  0xc7   : > { %703 = vrcp.f32 %v358_v18 }
  0xd3   : > { %v702_v22 = vpop.eup %701 }
  0xd4   : > { %v704_v24 = vpop.eup %703  ;;  %705 = vlog2.f32 %v702_v22  ;;  %v393_v25 = vsub.f32 1.0, %v702_v22 }
  0xd5   : > { %707 = vlog2.f32 %v704_v24  ;;  %v394_v26 = vsub.f32 1.0, %v704_v24  ;;  %v365_v27 = vcombine.low %v702_v22, %v704_v24 }
  0xd6   : > { %709 = vlog2.f32 %v393_v25 }
  0xd7   : > { %711 = vlog2.f32 %v394_v26  ;;  %v372_v29 = vrot.slane %v365_v27, %v371_v23 }
  0xd9   : > { %v379_v30 = vrot.slane %v372_v29, %v371_v23 }
  0xdb   : > { %385 = vst.msk [vmem:[%s948_s13] sm:$0x3] %vm383_vm0, %v379_v30 }
  0xe1   : > { %v706_v36 = vpop.eup %705 }
  0xe2   : > { %v708_v37 = vpop.eup %707  ;;  %v388_v38 = vmul.f32 0.6931472, %v706_v36 }
  0xe3   : > { %v710_v39 = vpop.eup %709  ;;  %v390_v40 = vmul.f32 0.6931472, %v708_v37 }
  0xe4   : > { %v712_v9 = vpop.eup %711  ;;  %v391_v41 = vmax.f32 %v388_v38, -100.0  ;;  %v396_v42 = vmul.f32 0.6931472, %v710_v39 }
  0xe5   : > { %v392_v43 = vmax.f32 %v390_v40, -100.0  ;;  %v398_v44 = vmul.f32 0.6931472, %v712_v9 }
  0xe6   : > { %v399_v45 = vmax.f32 %v396_v42, -100.0 }
  0xe7   : > { %v400_v49 = vmax.f32 %v398_v44, -100.0  ;;  %v403_v50 = vcombine.low %v391_v41, %v392_v43 }
  0xe9   : > { %v410_v52 = vrot.slane %v403_v50, %v371_v23  ;;  %v423_v53 = vcombine.low %v399_v45, %v400_v49 }
  0xeb   : > { %v417_v55 = vrot.slane %v410_v52, %v371_v23  ;;  %v430_v57 = vrot.slane %v423_v53, %v371_v23 }
  0xed   : > { %v419_v58 = vmul.f32 %v417_v55, %v386_v51  ;;  %v437_v59 = vrot.slane %v430_v57, %v371_v23 }
  0xef   : > { %v439_v61 = vmul.f32 %v437_v59, %v420_v56 }
  0xf1   : > { %v440_v62 = vadd.f32 %v439_v61, %v419_v58 }
  0xf3   : > { %v441_v0 = vsub.f32 0.0, %v440_v62 }
  0xf5   : > { %v475_v1 = vmul.f32 %v473_v63, %v441_v0 }
  0xf7   : > { %v480_v2 = vrot.slane %v475_v1, %v239_v11  ;;  %v484_v3 = vrot.slane %v475_v1, %v243_v12 }
  0xf9   : > { %v488_v4 = vsel %vm487_vm3, %v480_v2, 0.0  ;;  %v489_v5 = vsel %vm487_vm3, %v484_v3, 0.0 }
  0xfa   : > { %v490_v6 = vadd.f32 %v489_v5, %v488_v4 }
  0xfc   : > { %491 = vadd.xlane.f32.xlu0 %v490_v6 }
  0xfd   : > { %726 = shalt.err (!%p723_p3)
}
  0xfe   : > { %s727_s11 = scalar_lea.hbm %s519_s24, 32  ;;  %s731_s14 = scalar_lea.hbm %s1022_s4, 64 }
  0xff   : > { %p728_p4 = scmp.ne.s32.totalorder %s519_s24, %s727_s11  ;;  %p732_p9 = scmp.lt.s32.totalorder %s519_s24, %s1022_s4 }
 0x100   : > { %p733_p10 = scmp.lt.s32.totalorder %s731_s14, %s727_s11 }
 0x101   : > { %p729_p7 = pnand %p728_p4, %p881_p5 }
 0x102   : > { %p734_p11 = por %p733_p10, %p732_p9 }
 0x103   : > { %p730_p8 = pneg %p729_p7 }
 0x105   : > { %p735_p12 = pnand %p734_p11, %p730_p8 }
 0x107   : > { %738 = shalt.err (!%p735_p12)
}
 0x108   : > { %648 = dma.vmem_to_hbm [thread:$0]  (%p881_p5), %s522_s26, 32, %s519_s24, %s503_s27  }
 0x109   : > { %s215_s17 = scalar_lea.vmem [#allocation6], %s941_s9  ;;  %s642_s19 = sshll.u32 %s864_s0, 4 }
 0x10a   : > { %s534_s18 = sshll.u32 %s215_s17, 4  ;;  %s532_s27 = scalar_lea.hbm %s1023_s5, %s642_s19  ;;  %s979_s18 = int_to_ptr.vmem [resolvable:$true] %s534_s18 }
 0x10b   : > { %s508_s7 = scalar_lea.sflag [#allocation7], %s941_s9  ;;  %s739_s8 = scalar_lea.vmem %s979_s18, 16 }
 0x10c   : > { %p740_p13 = scmp.ne.s32.totalorder %s979_s18, %s739_s8  ;;  %s809_s10 = smov [#allocation6]  }
 0x10d   : > { %s743_s0 = sshll.u32 %s809_s10, 4  ;;  %s744_s0 = int_to_ptr.vmem [resolvable:$false] %s743_s0 }
 0x10e   : > { %p741_p0 = pnand %p740_p13, %p881_p5  ;;  %s745_s11 = scalar_lea.vmem %s744_s0, 32 }
 0x10f   : > { %p746_p2 = scmp.lt.s32.totalorder %s979_s18, %s744_s0  ;;  %p747_p3 = scmp.lt.s32.totalorder %s745_s11, %s739_s8 }
 0x110   : > { %p742_p1 = pneg %p741_p0 }
 0x111   : > { %p748_p4 = por %p747_p3, %p746_p2 }
 0x113   : > { %p749_p7 = pnand %p748_p4, %p742_p1 }
 0x185   : > { %v492_v10 = vpop.xlane.xlu0 %491 }
 0x186   : > { %v493_v11 = vrot.slane %v492_v10, 4 }
 0x188   : > { %v494_v12 = vadd.f32 %v493_v11, %v492_v10 }
 0x18a   : > { %v495_v7 = vrot.slane %v494_v12, 2 }
 0x18c   : > { %v496_v8 = vadd.f32 %v495_v7, %v494_v12 }
 0x18e   : > { %v497_v13 = vrot.slane %v496_v8, 1 }
 0x190   : > { %v498_v14 = vadd.f32 %v497_v13, %v496_v8 }
 0x192   : > { %646 = vpush %v498_v14 }
 0x1c3   : > { %s647_s6 = spop %646 }
 0x1c4   : > { %v500_v15 = vstv %s647_s6 }
 0x1c5   : > { %501 = vst [vmem:[%s215_s17] sm:$0x1] %v500_v15 }
 0x1c6   : > { %752 = shalt.err (!%p749_p7)
}
 0x1c7   : > { %s753_s12 = scalar_lea.hbm %s532_s27, 16  ;;  %s757_s14 = scalar_lea.hbm %s1023_s5, 32 }
 0x1c8   : > { %p754_p8 = scmp.ne.s32.totalorder %s532_s27, %s753_s12  ;;  %p758_p11 = scmp.lt.s32.totalorder %s532_s27, %s1023_s5 }
 0x1c9   : > { %p759_p12 = scmp.lt.s32.totalorder %s757_s14, %s753_s12 }
 0x1ca   : > { %p755_p9 = pnand %p754_p8, %p881_p5 }
 0x1cb   : > { %p760_p13 = por %p759_p12, %p758_p11 }
 0x1cc   : > { %p756_p10 = pneg %p755_p9 }
 0x1ce   : > { %p761_p0 = pnand %p760_p13, %p756_p10 }
 0x1d0   : > { %764 = shalt.err (!%p761_p0)
}
 0x1d1   : > { %649 = dma.vmem_to_hbm [thread:$0]  (%p881_p5), %s979_s18, 16, %s532_s27, %s508_s7  }
 0x1d2 PF: > { %p659_p1 = scmp.ge.s32.totalorder %s803_s23, 2  ;;  %s546_s17 = sand.u32 1, %s791_s20  }
 0x1d3   : > { %s547_s19 = scalar_lea.sflag [#allocation5], %s546_s17 }
 0x1d4   : > { %p653_p2 = pnand %p659_p1, %p885_p6 }
 0x1d6   : > { %p654_p3 = pneg %p653_p2 }
 0x1d8   : > { %782 = dma.done.wait (%p654_p3), %s547_s19, 32  }
 0x1d9   : > { %784 = vsyncadd (%p654_p3), %s547_s19, 4294967264  ;;  %s556_s6 = scalar_lea.sflag [#allocation7], %s546_s17 }
 0x1da   : > { %786 = dma.done.wait (%p654_p3), %s556_s6, 16  }
 0x1db   : > { %788 = vsyncadd (%p654_p3), %s556_s6, 4294967280  ;;  %p20_p5 = scmp.ge.s32.totalorder %s868_s25, 4   ;;  %s1026_s20 = smov %s795_s21 }
 0x1dc   : > { %s1027_s21 = smov %s799_s22  ;;  %s1028_s22 = smov %s879_s28 }
 0x1dd   : > { %s1029_s23 = smov %s868_s25  ;;  %22 = sbr.rel (!%p20_p5) target bundleno = 7 (0x7), region = 87 }
 0x1e2   :  { %560 = vsyncpa [#allocation5], 1 }
 0x1e3   :  { %562 = vsyncpa [#allocation5 + $0x1], 1 }
 0x1e4   :  { %563 = vsyncpa [#allocation7], 1 }
 0x1e5   :  { %565 = vsyncpa [#allocation7 + $0x1], 1 }

</bundles_post_ra>
